<compile_context>
chip_gen: v7x
topology: tpu7x:2x2x1
jax: 0.10.0
libtpu: 0.0.40
codegen_flags: <defaults>
</compile_context>

<pallas_src>
import jax
import jax.numpy as jnp
from jax.experimental import pallas as pl
from jax.experimental.pallas import tpu as pltpu

LANE = 128
SUBLANE = 8


def _round_up(n, m):
    return ((n + m - 1) // m) * m


def _padded_bytes(rows, cols, itemsize):
    """VMEM footprint of a 2D buffer after (sublane, lane) layout padding."""
    return (_round_up(max(int(rows), 1), SUBLANE)
            * _round_up(max(int(cols), 1), LANE)
            * int(itemsize))


def _vmem_capacity_bytes():
    try:
        return int(pltpu.get_tpu_info().vmem_capacity_bytes)
    except Exception:
        return 64 * 1024 * 1024  # conservative fallback (v7x per-TC VMEM)


def _estimate_vmem_bytes(tb, D, kernel_params):
    """Conservative per-step VMEM estimate, layout padding included."""
    total = 2 * _padded_bytes(tb, D, 4)        # pipelined x tile (double-buffered)
    total += 2 * _padded_bytes(tb, 1, 4)       # pipelined (tb, 1) output tile
    for (w, b) in kernel_params:               # single-buffered (pl.Buffered(1))
        total += _padded_bytes(w.shape[0], w.shape[1], jnp.dtype(w.dtype).itemsize)
        total += _padded_bytes(b.shape[0], b.shape[1], 4)
    # Live f32 intermediates: cast x + every hidden activation.
    total += _padded_bytes(tb, D, 4)
    for (w, _) in kernel_params[:-1]:
        total += _padded_bytes(tb, w.shape[1], 4)
    return total


def _choose_batch_tile(B, D, kernel_params, vmem_budget, cap=4096):
    """Largest multiple-of-8 divisor of B that fits the VMEM budget.

    Prefers grid >= 2 so the "parallel" batch axis can be split across v7x's two
    TensorCores (irrelevant but harmless on single-TC v5e/v6e).
    """
    cands = [t for t in range(SUBLANE, min(B, cap) + 1, SUBLANE) if B % t == 0]
    if not cands:
        cands = [B]  # tiny / non-multiple-of-8 batch: single full block
    fitting = [t for t in cands
               if _estimate_vmem_bytes(t, D, kernel_params) <= vmem_budget]
    if not fitting:
        fitting = [cands[0]]
    multi = [t for t in fitting if B // t >= 2]
    return max(multi) if multi else max(fitting)


def make_mlp_kernel(n_hidden):
    """Fused MLP forward kernel.

    Ref order: x_ref, (w0, b0), ..., (w_{n_hidden-1}, b_{n_hidden-1}),
               w_last, b_last, out_ref.
    Hidden layers: h = relu(h @ W + b) on the MXU (f32 accumulate).
    Head (out_dim == 1): VPU multiply + lane reduction, then sigmoid (EUP).
    """

    def kernel(x_ref, *refs):
        o_ref = refs[-1]
        param_refs = refs[:-1]

        h = x_ref[...]
        if h.dtype != jnp.float32:
            h = h.astype(jnp.float32)

        for i in range(n_hidden):
            w = param_refs[2 * i][...]                 # (prev_pad, hid_pad)
            b = param_refs[2 * i + 1][...]             # (1, hid_pad), f32
            lhs = h if h.dtype == w.dtype else h.astype(w.dtype)
            h = jnp.dot(lhs, w, preferred_element_type=jnp.float32) + b
            h = jnp.maximum(h, 0.0)                    # ReLU, f32 on the VPU
            # TODO(synk): training-mode dropout (scaled Bernoulli mask via
            # pltpu.prng_seed / pltpu.prng_random_bits) omitted; eval forward
            # (the module's inference semantics) is identity.

        # Final Linear(prev, 1): lane-wise multiply + reduction (an N=1 matmul
        # would waste 255/256 of the MXU's output columns), then sigmoid (EUP).
        w_last = param_refs[2 * n_hidden][...].astype(jnp.float32)    # (1, prev_pad)
        b_last = param_refs[2 * n_hidden + 1][...]                    # (1, 1), f32
        logit = jnp.sum(h * w_last, axis=-1, keepdims=True) + b_last  # (tb, 1)
        o_ref[...] = jax.nn.sigmoid(logit).astype(o_ref.dtype)

    return kernel


def interaction_classifier_forward(x, kernel_params, *, batch_tile=None):
    """Fused MLP forward.

    Args:
      x: [B, input_dim] float32.
      kernel_params: output of prepare_kernel_params() (transposed + lane-padded).
      batch_tile: rows per grid step (default: auto from VMEM budget).
    Returns:
      [B, 1] float32 sigmoid probabilities.
    """
    B, D = x.shape
    n_hidden = len(kernel_params) - 1

    vmem_budget = int(0.75 * _vmem_capacity_bytes())
    tb = (_choose_batch_tile(B, D, kernel_params, vmem_budget)
          if batch_tile is None else batch_tile)
    assert B % tb == 0, f"batch {B} must be divisible by batch_tile {tb}"

    kernel = make_mlp_kernel(n_hidden)

    # Constant index map -> weights/biases stay VMEM-resident; a single revolving
    # buffer (instead of the default 2) halves their VMEM footprint.
    resident = {"pipeline_mode": pl.Buffered(1)} if hasattr(pl, "Buffered") else {}

    in_specs = [pl.BlockSpec((tb, D), lambda i: (i, 0))]
    flat_params = []
    for (w, b) in kernel_params:
        # TODO(synk): for hidden dims where even single-buffered weights approach
        # the VMEM budget (esp. v7x 64 MiB), switch to memory_space=pl.ANY with a
        # one-time pltpu.make_async_copy, or tile the contraction dim on an extra
        # "arbitrary" grid axis with a pl.when-initialized accumulator.
        in_specs.append(pl.BlockSpec(w.shape, lambda i: (0, 0), **resident))
        in_specs.append(pl.BlockSpec(b.shape, lambda i: (0, 0), **resident))
        flat_params.extend([w, b])

    out_specs = pl.BlockSpec((tb, 1), lambda i: (i, 0))

    est = _estimate_vmem_bytes(tb, D, kernel_params)
    vmem_limit = int(min(vmem_budget, max(2 * est, 32 * 1024 * 1024)))
    vmem_limit = max(vmem_limit, est)

    flops = sum(2 * B * int(w.size) for (w, _) in kernel_params)
    bytes_accessed = (int(x.size) * x.dtype.itemsize
                      + sum(int(w.size) * jnp.dtype(w.dtype).itemsize
                            + int(b.size) * 4 for (w, b) in kernel_params)
                      + B * 4)
    cost = pl.CostEstimate(flops=flops, transcendentals=B,
                           bytes_accessed=bytes_accessed)

    return pl.pallas_call(
        kernel,
        out_shape=jax.ShapeDtypeStruct((B, 1), jnp.float32),
        grid=(B // tb,),
        in_specs=in_specs,
        out_specs=out_specs,
        compiler_params=pltpu.CompilerParams(
            dimension_semantics=("parallel",),
            vmem_limit_bytes=vmem_limit,
        ),
        cost_estimate=cost,
    )(x, *flat_params)


def init_params(key, input_dim, hidden_dims):
    """PyTorch-layout params: W of shape (out, in), b of shape (out,)."""
    dims = [input_dim] + list(hidden_dims) + [1]
    params = []
    for i in range(len(dims) - 1):
        key, kw, kb = jax.random.split(key, 3)
        fan_in = dims[i]
        bound = 1.0 / float(fan_in) ** 0.5
        w = jax.random.uniform(kw, (dims[i + 1], dims[i]), jnp.float32, -bound, bound)
        b = jax.random.uniform(kb, (dims[i + 1],), jnp.float32, -bound, bound)
        params.append((w, b))
    return params


def prepare_kernel_params(params, input_dim, *, param_dtype=jnp.bfloat16):
    """Transpose PyTorch-layout weights and zero-pad feature dims to 128 lanes.

    Zero padding is exactly semantics-preserving: padded columns get 0 bias,
    relu(0)=0, and padded rows of the next weight are 0.
    Hidden layers -> (prev_pad, hid_pad) weights, (1, hid_pad) f32 biases.
    Final layer  -> (1, prev_pad) weight row, (1, 1) f32 bias.
    """
    prev = input_dim
    prev_pad = input_dim  # x is passed unpadded; its block covers the full dim
    kparams = []
    for (w, b) in params[:-1]:
        out_dim = int(w.shape[0])
        out_pad = _round_up(out_dim, LANE)
        wt = jnp.zeros((prev_pad, out_pad), param_dtype)
        wt = wt.at[:prev, :out_dim].set(w.T.astype(param_dtype))
        bp = jnp.zeros((1, out_pad), jnp.float32)
        bp = bp.at[0, :out_dim].set(b.astype(jnp.float32))
        kparams.append((wt, bp))
        prev, prev_pad = out_dim, out_pad

    w_last, b_last = params[-1]  # (1, prev), (1,)
    wl = jnp.zeros((1, prev_pad), param_dtype)
    wl = wl.at[0, :prev].set(w_last[0].astype(param_dtype))
    bl = jnp.asarray(b_last, jnp.float32).reshape(1, 1)
    kparams.append((wl, bl))
    return kparams


def reference_forward(x, params):
    """Pure-JAX reference using the original PyTorch-layout params."""
    h = x
    n = len(params)
    for i, (w, b) in enumerate(params):
        h = h @ w.T + b
        if i < n - 1:
            h = jnp.maximum(h, 0.0)
    return jax.nn.sigmoid(h)


if __name__ == "__main__":
    # Shapes consistent with the module: input_dim=32, hidden_dims=[64, 32],
    # dropout_rates=[0.1, 0.1].  Batch=256 -> auto tile 128, grid of 2 steps.
    input_dim = 32
    hidden_dims = [64, 32]
    batch = 256

    key = jax.random.PRNGKey(0)
    key, kx = jax.random.split(key)
    x = jax.random.normal(kx, (batch, input_dim), jnp.float32)

    params = init_params(key, input_dim, hidden_dims)   # PyTorch layout
    ref = reference_forward(x, params)

    # Strict correctness check with f32 weights.
    kp_f32 = prepare_kernel_params(params, input_dim, param_dtype=jnp.float32)
    out_f32 = jax.block_until_ready(interaction_classifier_forward(x, kp_f32))
    assert out_f32.shape == (batch, 1)
    assert jnp.allclose(out_f32, ref, atol=1e-5, rtol=1e-5)

    # Default fast path: bf16 weights on the MXU, f32 accumulate / elementwise.
    kp_bf16 = prepare_kernel_params(params, input_dim)
    out_bf16 = jax.block_until_ready(interaction_classifier_forward(x, kp_bf16))
    assert out_bf16.shape == (batch, 1)
    assert jnp.allclose(out_bf16, ref, atol=2e-2, rtol=2e-2)

    print("KERNEL_OK")
</pallas_src>

<mosaic_0001>
module attributes {stable_mosaic.version = 11 : i64} {
  func.func @kernel(%arg0: i32, %arg1: memref<128x32xf32, #tpu.memory_space<vmem>>, %arg2: memref<32x128xf32, #tpu.memory_space<vmem>>, %arg3: memref<1x128xf32, #tpu.memory_space<vmem>>, %arg4: memref<128x128xf32, #tpu.memory_space<vmem>>, %arg5: memref<1x128xf32, #tpu.memory_space<vmem>>, %arg6: memref<1x128xf32, #tpu.memory_space<vmem>>, %arg7: memref<1x1xf32, #tpu.memory_space<vmem>>, %arg8: memref<128x1xf32, #tpu.memory_space<vmem>>) attributes {dimension_semantics = [#tpu.dimension_semantics<parallel>], iteration_bounds = array<i64: 2>, scalar_prefetch = 0 : i64, scratch_operands = 0 : i64, tpu.core_type = #tpu.core_type<tc>, window_params = [{transform_indices = @transform_0, window_bounds = array<i64: 128, 32>}, {pipeline_mode = #tpu.pipeline_mode<synchronous>, transform_indices = @transform_1, window_bounds = array<i64: 32, 128>}, {pipeline_mode = #tpu.pipeline_mode<synchronous>, transform_indices = @transform_2, window_bounds = array<i64: 1, 128>}, {pipeline_mode = #tpu.pipeline_mode<synchronous>, transform_indices = @transform_3, window_bounds = array<i64: 128, 128>}, {pipeline_mode = #tpu.pipeline_mode<synchronous>, transform_indices = @transform_4, window_bounds = array<i64: 1, 128>}, {pipeline_mode = #tpu.pipeline_mode<synchronous>, transform_indices = @transform_5, window_bounds = array<i64: 1, 128>}, {pipeline_mode = #tpu.pipeline_mode<synchronous>, transform_indices = @transform_6, window_bounds = array<i64: 1, 1>}, {transform_indices = @transform_7, window_bounds = array<i64: 128, 1>}]} {
    %c0 = arith.constant 0 : index
    %c0_0 = arith.constant 0 : index
    %0 = vector.load %arg1[%c0, %c0_0] : memref<128x32xf32, #tpu.memory_space<vmem>>, vector<128x32xf32>
    %c0_1 = arith.constant 0 : index
    %c0_2 = arith.constant 0 : index
    %1 = vector.load %arg2[%c0_1, %c0_2] : memref<32x128xf32, #tpu.memory_space<vmem>>, vector<32x128xf32>
    %c0_3 = arith.constant 0 : index
    %c0_4 = arith.constant 0 : index
    %2 = vector.load %arg3[%c0_3, %c0_4] : memref<1x128xf32, #tpu.memory_space<vmem>>, vector<1x128xf32>
    %cst = arith.constant dense<0.000000e+00> : vector<128x128xf32>
    %3 = tpu.matmul %0, %1, %cst {dimension_numbers = #tpu.dot_dimension_numbers<[1], [0], [0], [1], [0, 0, 1, 1], [], []>} : vector<128x32xf32>, vector<32x128xf32>, vector<128x128xf32> -> vector<128x128xf32>
    %4 = vector.broadcast %2 : vector<1x128xf32> to vector<128x128xf32>
    %5 = arith.addf %3, %4 : vector<128x128xf32>
    %cst_5 = arith.constant 0.000000e+00 : f32
    %6 = vector.broadcast %cst_5 : f32 to vector<128x128xf32>
    %7 = arith.maximumf %5, %6 : vector<128x128xf32>
    %c0_6 = arith.constant 0 : index
    %c0_7 = arith.constant 0 : index
    %8 = vector.load %arg4[%c0_6, %c0_7] : memref<128x128xf32, #tpu.memory_space<vmem>>, vector<128x128xf32>
    %c0_8 = arith.constant 0 : index
    %c0_9 = arith.constant 0 : index
    %9 = vector.load %arg5[%c0_8, %c0_9] : memref<1x128xf32, #tpu.memory_space<vmem>>, vector<1x128xf32>
    %cst_10 = arith.constant dense<0.000000e+00> : vector<128x128xf32>
    %10 = tpu.matmul %7, %8, %cst_10 {dimension_numbers = #tpu.dot_dimension_numbers<[1], [0], [0], [1], [0, 0, 1, 1], [], []>} : vector<128x128xf32>, vector<128x128xf32>, vector<128x128xf32> -> vector<128x128xf32>
    %11 = vector.broadcast %9 : vector<1x128xf32> to vector<128x128xf32>
    %12 = arith.addf %10, %11 : vector<128x128xf32>
    %cst_11 = arith.constant 0.000000e+00 : f32
    %13 = vector.broadcast %cst_11 : f32 to vector<128x128xf32>
    %14 = arith.maximumf %12, %13 : vector<128x128xf32>
    %c0_12 = arith.constant 0 : index
    %c0_13 = arith.constant 0 : index
    %15 = vector.load %arg6[%c0_12, %c0_13] : memref<1x128xf32, #tpu.memory_space<vmem>>, vector<1x128xf32>
    %c0_14 = arith.constant 0 : index
    %c0_15 = arith.constant 0 : index
    %16 = vector.load %arg7[%c0_14, %c0_15] : memref<1x1xf32, #tpu.memory_space<vmem>>, vector<1x1xf32>
    %17 = vector.broadcast %15 : vector<1x128xf32> to vector<128x128xf32>
    %18 = arith.mulf %14, %17 : vector<128x128xf32>
    %cst_16 = arith.constant dense<0.000000e+00> : vector<128xf32>
    %19 = vector.multi_reduction <add>, %18, %cst_16 [1] : vector<128x128xf32> to vector<128xf32>
    %20 = vector.shape_cast %19 : vector<128xf32> to vector<128x1xf32>
    %21 = vector.broadcast %16 : vector<1x1xf32> to vector<128x1xf32>
    %22 = arith.addf %20, %21 : vector<128x1xf32>
    %23 = arith.negf %22 : vector<128x1xf32>
    %24 = math.exp %23 : vector<128x1xf32>
    %cst_17 = arith.constant 1.000000e+00 : f32
    %25 = vector.broadcast %cst_17 : f32 to vector<128x1xf32>
    %26 = arith.addf %25, %24 : vector<128x1xf32>
    %27 = arith.divf %25, %26 : vector<128x1xf32>
    %c0_18 = arith.constant 0 : index
    %c0_19 = arith.constant 0 : index
    %28 = vector.load %arg8[%c0_18, %c0_19] : memref<128x1xf32, #tpu.memory_space<vmem>>, vector<128x1xf32>
    tpu.vector_store %arg8[%c0_18, %c0_19], %27 {strides = array<i32>} : memref<128x1xf32, #tpu.memory_space<vmem>>, vector<128x1xf32>,
    return
  }
  func.func @transform_0(%arg0: i32) -> (i32, i32) {
    %c0_i32 = arith.constant 0 : i32
    %c0_i32_0 = arith.constant 0 : i32
    return %arg0, %c0_i32 : i32, i32
  }
  func.func @transform_1(%arg0: i32) -> (i32, i32) {
    %c0_i32 = arith.constant 0 : i32
    %c0_i32_0 = arith.constant 0 : i32
    %c0_i32_1 = arith.constant 0 : i32
    return %c0_i32, %c0_i32_0 : i32, i32
  }
  func.func @transform_2(%arg0: i32) -> (i32, i32) {
    %c0_i32 = arith.constant 0 : i32
    %c0_i32_0 = arith.constant 0 : i32
    %c0_i32_1 = arith.constant 0 : i32
    return %c0_i32, %c0_i32_0 : i32, i32
  }
  func.func @transform_3(%arg0: i32) -> (i32, i32) {
    %c0_i32 = arith.constant 0 : i32
    %c0_i32_0 = arith.constant 0 : i32
    %c0_i32_1 = arith.constant 0 : i32
    return %c0_i32, %c0_i32_0 : i32, i32
  }
  func.func @transform_4(%arg0: i32) -> (i32, i32) {
    %c0_i32 = arith.constant 0 : i32
    %c0_i32_0 = arith.constant 0 : i32
    %c0_i32_1 = arith.constant 0 : i32
    return %c0_i32, %c0_i32_0 : i32, i32
  }
  func.func @transform_5(%arg0: i32) -> (i32, i32) {
    %c0_i32 = arith.constant 0 : i32
    %c0_i32_0 = arith.constant 0 : i32
    %c0_i32_1 = arith.constant 0 : i32
    return %c0_i32, %c0_i32_0 : i32, i32
  }
  func.func @transform_6(%arg0: i32) -> (i32, i32) {
    %c0_i32 = arith.constant 0 : i32
    %c0_i32_0 = arith.constant 0 : i32
    %c0_i32_1 = arith.constant 0 : i32
    return %c0_i32, %c0_i32_0 : i32, i32
  }
  func.func @transform_7(%arg0: i32) -> (i32, i32) {
    %c0_i32 = arith.constant 0 : i32
    %c0_i32_0 = arith.constant 0 : i32
    return %arg0, %c0_i32 : i32, i32
  }
}

</mosaic_0001>

<bundles_post_ra>
// kernel: tpu_custom_call.1
= control target key start
LH: loop header
LB: loop body
LE: loop exit
PB: predicated region body
PF: predicated region fallthrough
CT: control target
= control target key end

     0   :  { %s1318_s26 = smov 0   ;;  %s1533_s0 = inlined_call_operand.vmem [shape: f32[256,32], index: 0, kind: input, shape index: {}]   ;;  %s1534_s1 = inlined_call_operand.vmem [shape: f32[32,128], index: 1, kind: input, shape index: {}]   ;;  %s1535_s2 = inlined_call_operand.vmem [shape: f32[1,128], index: 2, kind: input, shape index: {}]   ;;  %s1536_s3 = inlined_call_operand.vmem [shape: f32[128,128], index: 3, kind: input, shape index: {}]   ;;  %s1537_s4 = inlined_call_operand.vmem [shape: f32[1,128], index: 4, kind: input, shape index: {}]   ;;  %s1538_s5 = inlined_call_operand.vmem [shape: f32[1,128], index: 5, kind: input, shape index: {}]   ;;  %s1539_s6 = inlined_call_operand.<no memory space> [shape: f32[1,1], index: 6, kind: input, shape index: {}]   ;;  %s1540_s7 = inlined_call_operand.vmem [shape: f32[256,1], index: 7, kind: output, shape index: {}]  }
   0x1   :  { %v12_v0 = vstv %s1539_s6 }
   0x2   :  { %13 = vst [vmem:[#allocation2] sm:$0x1] %v12_v0 }
   0x3 LB: > { %s952_s27 = sadd.s32 4294967295, %s1273_s26   ;;  %p956_p0 = scmp.ge.s32.totalorder %s1273_s26, 1  ;;  %s1273_s26 = sphi %s1318_s26, %s19_s26  }
   0x4   : > { %p240_p1 = scmp.lt.s32.totalorder %s1273_s26, 3 }
   0x6   : > { %p241_p2 = pnand %p956_p0, %p240_p1 }
   0x7   : > { %v300_v1 = vld [vmem:[%s1534_s1] sm:$0xff] (!%p241_p2)  ;;  %v301_v2 = vld [vmem:[%s1534_s1 + $0x8] sm:$0xff] (!%p241_p2)  ;;  %v302_v3 = vld [vmem:[%s1534_s1 + $0x10] sm:$0xff] (!%p241_p2)  ;;  %s957_s10 = sshll.u32 (!%p241_p2), %s952_s27, 4  ;;  %vm311_vm0 = vcmask (!%p241_p2), 261120   ;;  %vm879_vm1 = vcmask (!%p241_p2), 7168  }
   0x8   : > { %244 = sbr.rel (%p241_p2) target bundleno = 661 (0x295), region = 48  ;;  %v1139_v4 = vpack.c.bf16 (!%p241_p2), %v301_v2, %v300_v1  ;;  %v303_v5 = vld [vmem:[%s1534_s1 + $0x18] sm:$0xff] (!%p241_p2)  ;;  %p273_p3 = scmp.lt.s32.totalorder (!%p241_p2), %s957_s10, 31  ;;  %v521_v6 = vld [vmem:[%s1536_s3] sm:$0xff] (!%p241_p2)  ;;  %v522_v7 = vld [vmem:[%s1536_s3 + $0x8] sm:$0xff] (!%p241_p2) }
   0x9   : > { %v1143_v8 = vpack.c.bf16 (!%p241_p2), %v303_v5, %v302_v3  ;;  %v1147_v9 = vpack.c.bf16 (!%p241_p2), %v522_v7, %v521_v6  ;;  %v523_v10 = vld [vmem:[%s1536_s3 + $0x10] sm:$0xff] (!%p241_p2)  ;;  %v524_v11 = vld [vmem:[%s1536_s3 + $0x18] sm:$0xff] (!%p241_p2)  ;;  %v525_v13 = vld [vmem:[%s1536_s3 + $0x20] sm:$0xff] (!%p241_p2) }
   0xa   : > { %1140 = vmatprep.subr.bf16.mxu0 (!%p241_p2), %v1139_v4  ;;  %v1151_v12 = vpack.c.bf16 (!%p241_p2), %v524_v11, %v523_v10  ;;  %v526_v14 = vld [vmem:[%s1536_s3 + $0x28] sm:$0xff] (!%p241_p2)  ;;  %v527_v19 = vld [vmem:[%s1536_s3 + $0x30] sm:$0xff] (!%p241_p2)  ;;  %v528_v20 = vld [vmem:[%s1536_s3 + $0x38] sm:$0xff] (!%p241_p2) }
   0xb   : > { %1142 = vmatpush3.bf16.msra.mxu0 (!%p241_p2), %v1139_v4  ;;  %1179 = vmatprep.subr.bf16.mxu1 (!%p241_p2), %v1147_v9  ;;  %v1155_v17 = vpack.c.bf16 (!%p241_p2), %v526_v14, %v525_v13  ;;  %v1159_v22 = vpack.c.bf16 (!%p241_p2), %v528_v20, %v527_v19  ;;  %v529_v24 = vld [vmem:[%s1536_s3 + $0x40] sm:$0xff] (!%p241_p2)  ;;  %v530_v25 = vld [vmem:[%s1536_s3 + $0x48] sm:$0xff] (!%p241_p2)  ;;  %v531_v29 = vld [vmem:[%s1536_s3 + $0x50] sm:$0xff] (!%p241_p2) }
   0xc   : > { %1144 = vmatprep.subr.bf16.mxu0 (!%p241_p2), %v1143_v8  ;;  %1187 = vmatpush3.bf16.msra.mxu1 (!%p241_p2), %v1147_v9  ;;  %v1163_v27 = vpack.c.bf16 (!%p241_p2), %v530_v25, %v529_v24  ;;  %v532_v30 = vld [vmem:[%s1536_s3 + $0x58] sm:$0xff] (!%p241_p2)  ;;  %v533_v34 = vld [vmem:[%s1536_s3 + $0x60] sm:$0xff] (!%p241_p2)  ;;  %v534_v35 = vld [vmem:[%s1536_s3 + $0x68] sm:$0xff] (!%p241_p2) }
   0xd   : > { %1180 = vmatprep.subr.bf16.mxu1 (!%p241_p2), %v1151_v12  ;;  %v1167_v32 = vpack.c.bf16 (!%p241_p2), %v532_v30, %v531_v29  ;;  %v1171_v37 = vpack.c.bf16 (!%p241_p2), %v534_v35, %v533_v34  ;;  %v535_v44 = vld [vmem:[%s1536_s3 + $0x70] sm:$0xff] (!%p241_p2)  ;;  %v536_v45 = vld [vmem:[%s1536_s3 + $0x78] sm:$0xff] (!%p241_p2)  ;;  %v961_v47 = vld [vmem:[%s1535_s2] ss:$0 sm:$0xff] (!%p241_p2) }
   0xe   : > { %v1175_v46 = vpack.c.bf16 (!%p241_p2), %v536_v45, %v535_v44 }
   0xf   : > { %s1542_s10 = smov (!%p273_p3, %s957_s10), 31  ;;  %1146 = vmatpush3.bf16.msra.mxu0 %v1143_v8 }
  0x10   : > { %s958_s21 = sshll.u32 %s1542_s10, 3  ;;  %1148 = vmatprep.subr.bf16.mxu0 %v1147_v9  ;;  %1188 = vmatpush3.bf16.msra.mxu1 %v1151_v12 }
  0x11   : > { %s1364_s29 = scalar_lea.vmem %s1533_s0, %s958_s21  ;;  %1181 = vmatprep.subr.bf16.mxu1 %v1155_v17  ;;  %s1492_s14 = scalar_lea.vmem %s1540_s7, %s958_s21 }
  0x12   : > { %v284_v15 = vld [vmem:[%s1364_s29] sm:$0xff]  ;;  %v285_v16 = vld [vmem:[%s1364_s29 + $0x8] sm:$0xff]  ;;  %v286_v18 = vld [vmem:[%s1364_s29 + $0x10] sm:$0xff] }
  0x13   : > { %1059 = vmatprep.mubr.msk.f32.mxu0 %vm311_vm0, %v284_v15  ;;  %v287_v21 = vld [vmem:[%s1364_s29 + $0x18] sm:$0xff]  ;;  %v288_v23 = vld [vmem:[%s1364_s29 + $0x20] sm:$0xff]  ;;  %v289_v26 = vld [vmem:[%s1364_s29 + $0x28] sm:$0xff] }
  0x14   : > { %1060 = vmatmul.mubr.msk.f32.vlgmr.msra.gmra.mrb[0].mxu0 %vm311_vm0, %v285_v16  ;;  %1189 = vmatpush3.bf16.msra.mxu1 %v1155_v17  ;;  %v290_v28 = vld [vmem:[%s1364_s29 + $0x30] sm:$0xff]  ;;  %v291_v31 = vld [vmem:[%s1364_s29 + $0x38] sm:$0xff]  ;;  %v292_v33 = vld [vmem:[%s1364_s29 + $0x40] sm:$0xff] }
  0x15   : > { %1062 = vmatprep.mubr.msk.f32.mxu0 %vm311_vm0, %v286_v18  ;;  %1150 = vmatpush3.bf16.msra.mxu0 %v1147_v9  ;;  %v293_v36 = vld [vmem:[%s1364_s29 + $0x48] sm:$0xff]  ;;  %v294_v38 = vld [vmem:[%s1364_s29 + $0x50] sm:$0xff]  ;;  %v295_v39 = vld [vmem:[%s1364_s29 + $0x58] sm:$0xff] }
  0x16   : > { %1152 = vmatprep.subr.bf16.mxu0 %v1151_v12  ;;  %1182 = vmatprep.subr.bf16.mxu1 %v1159_v22  ;;  %v296_v40 = vld [vmem:[%s1364_s29 + $0x60] sm:$0xff]  ;;  %v297_v41 = vld [vmem:[%s1364_s29 + $0x68] sm:$0xff]  ;;  %v298_v42 = vld [vmem:[%s1364_s29 + $0x70] sm:$0xff] }
  0x17   : > { %v299_v43 = vld [vmem:[%s1364_s29 + $0x78] sm:$0xff] }
  0x18   : > { %1063 = vmatmul.mubr.msk.f32.gmra.mrb[2].mxu0 %vm311_vm0, %v287_v21  ;;  %1190 = vmatpush3.bf16.msra.mxu1 %v1159_v22 }
  0x19   : > { %1065 = vmatprep.mubr.msk.f32.mxu0 %vm311_vm0, %v288_v23  ;;  %1154 = vmatpush3.bf16.msra.mxu0 %v1151_v12 }
  0x1a   : > { %1156 = vmatprep.subr.bf16.mxu0 %v1155_v17  ;;  %1183 = vmatprep.subr.bf16.mxu1 %v1163_v27 }
  0x1c   : > { %1066 = vmatmul.mubr.msk.f32.gmra.mrb[4].mxu0 %vm311_vm0, %v289_v26  ;;  %1191 = vmatpush3.bf16.msra.mxu1 %v1163_v27 }
  0x1d   : > { %1068 = vmatprep.mubr.msk.f32.mxu0 %vm311_vm0, %v290_v28  ;;  %1158 = vmatpush3.bf16.msra.mxu0 %v1155_v17 }
  0x1e   : > { %1160 = vmatprep.subr.bf16.mxu0 %v1159_v22  ;;  %1184 = vmatprep.subr.bf16.mxu1 %v1167_v32 }
  0x20   : > { %1069 = vmatmul.mubr.msk.f32.gmra.mrb[6].mxu0 %vm311_vm0, %v291_v31  ;;  %1192 = vmatpush3.bf16.msra.mxu1 %v1167_v32 }
  0x21   : > { %1071 = vmatprep.mubr.msk.f32.mxu0 %vm311_vm0, %v292_v33  ;;  %1162 = vmatpush3.bf16.msra.mxu0 %v1159_v22 }
  0x22   : > { %1164 = vmatprep.subr.bf16.mxu0 %v1163_v27  ;;  %1185 = vmatprep.subr.bf16.mxu1 %v1171_v37 }
  0x24   : > { %1072 = vmatmul.mubr.msk.f32.gmra.mrb[8].mxu0 %vm311_vm0, %v293_v36  ;;  %1193 = vmatpush3.bf16.msra.mxu1 %v1171_v37 }
  0x25   : > { %1074 = vmatprep.mubr.msk.f32.mxu0 %vm311_vm0, %v294_v38  ;;  %1166 = vmatpush3.bf16.msra.mxu0 %v1163_v27 }
  0x26   : > { %1168 = vmatprep.subr.bf16.mxu0 %v1167_v32  ;;  %1186 = vmatprep.subr.bf16.mxu1 %v1175_v46 }
  0x28   : > { %1075 = vmatmul.mubr.msk.f32.gmra.mrb[10].mxu0 %vm311_vm0, %v295_v39  ;;  %1194 = vmatpush3.bf16.msra.mxu1 %v1175_v46 }
  0x29   : > { %1077 = vmatprep.mubr.msk.f32.mxu0 %vm311_vm0, %v296_v40  ;;  %1170 = vmatpush3.bf16.msra.mxu0 %v1167_v32  ;;  %v1434_v32 = vld [vmem:[%s1537_s4] ss:$0 sm:$0xff] }
  0x2a   : > { %1172 = vmatprep.subr.bf16.mxu0 %v1171_v37 }
  0x2c   : > { %1078 = vmatmul.mubr.msk.f32.gmra.mrb[12].mxu0 %vm311_vm0, %v297_v41 }
  0x2d   : > { %1080 = vmatprep.mubr.msk.f32.mxu0 %vm311_vm0, %v298_v42  ;;  %1174 = vmatpush3.bf16.msra.mxu0 %v1171_v37  ;;  %v1441_v37 = vld [vmem:[%s1538_s5] ss:$0 sm:$0xff] }
  0x2e   : > { %1176 = vmatprep.subr.bf16.mxu0 %v1175_v46 }
  0x30   : > { %1081 = vmatmul.mubr.msk.f32.gmra.mrb[14].mxu0 %vm311_vm0, %v299_v43 }
  0x31   : > { %1178 = vmatpush3.bf16.msra.mxu0 %v1175_v46 }
  0xe7   : > { %v1061_v48 = vpop.f32.mrb[0].mxu0 }
  0xe8   : > { %v432_v49 = vadd.f32 %v1061_v48, %v961_v47  ;;  %v426_v50 = vpop.f32.mrb[1].mxu0 }
  0xe9   : > { %v427_v51 = vadd.f32 %v961_v47, %v426_v50 }
  0xea   : > { %v506_v54 = vmax.f32 %v432_v49, 0.0 }
  0xeb   : > { %v505_v52 = vmax.f32 %v427_v51, 0.0  ;;  %v1064_v53 = vpop.f32.mrb[2].mxu0 }
  0xec   : > { %v442_v55 = vadd.f32 %v1064_v53, %v961_v47  ;;  %v436_v56 = vpop.f32.mrb[3].mxu0 }
  0xed   : > { %v437_v57 = vadd.f32 %v961_v47, %v436_v56  ;;  %1115 = vmatprep.mubr.f32.mxu0 %v505_v52 }
  0xee   : > { %1116 = vmatmul.mubr.f32.vlgmr.msra.gmra.mrb[16].mxu0 %v506_v54  ;;  %v508_v60 = vmax.f32 %v442_v55, 0.0 }
  0xef   : > { %v507_v58 = vmax.f32 %v437_v57, 0.0  ;;  %v1067_v59 = vpop.f32.mrb[4].mxu0 }
  0xf0   : > { %v452_v61 = vadd.f32 %v1067_v59, %v961_v47  ;;  %v446_v62 = vpop.f32.mrb[5].mxu0 }
  0xf1   : > { %v447_v63 = vadd.f32 %v961_v47, %v446_v62  ;;  %1118 = vmatprep.mubr.f32.mxu0 %v507_v58 }
  0xf2   : > { %v510_v0 = vmax.f32 %v452_v61, 0.0  ;;  %1119 = vmatmul.mubr.f32.gmra.mrb[18].mxu0 %v508_v60 }
  0xf3   : > { %v509_v1 = vmax.f32 %v447_v63, 0.0  ;;  %v1070_v2 = vpop.f32.mrb[6].mxu0 }
  0xf4   : > { %v462_v3 = vadd.f32 %v1070_v2, %v961_v47  ;;  %v456_v4 = vpop.f32.mrb[7].mxu0 }
  0xf5   : > { %1121 = vmatprep.mubr.f32.mxu0 %v509_v1  ;;  %v457_v5 = vadd.f32 %v961_v47, %v456_v4 }
  0xf6   : > { %v512_v6 = vmax.f32 %v462_v3, 0.0  ;;  %1122 = vmatmul.mubr.f32.gmra.mrb[20].mxu0 %v510_v0 }
  0xf7   : > { %v1073_v7 = vpop.f32.mrb[8].mxu0  ;;  %v511_v8 = vmax.f32 %v457_v5, 0.0 }
  0xf8   : > { %v472_v9 = vadd.f32 %v1073_v7, %v961_v47  ;;  %v466_v10 = vpop.f32.mrb[9].mxu0 }
  0xf9   : > { %v467_v11 = vadd.f32 %v961_v47, %v466_v10  ;;  %1124 = vmatprep.mubr.f32.mxu1 %v511_v8 }
  0xfa   : > { %v514_v12 = vmax.f32 %v472_v9, 0.0  ;;  %1125 = vmatmul.mubr.f32.vlgmr.msra.gmra.mrb[0].mxu1 %v512_v6 }
  0xfb   : > { %v513_v13 = vmax.f32 %v467_v11, 0.0  ;;  %v1076_v14 = vpop.f32.mrb[10].mxu0 }
  0xfc   : > { %v482_v15 = vadd.f32 %v1076_v14, %v961_v47  ;;  %v476_v16 = vpop.f32.mrb[11].mxu0 }
  0xfd   : > { %v477_v17 = vadd.f32 %v961_v47, %v476_v16  ;;  %1127 = vmatprep.mubr.f32.mxu1 %v513_v13 }
  0xfe   : > { %v516_v18 = vmax.f32 %v482_v15, 0.0  ;;  %1128 = vmatmul.mubr.f32.gmra.mrb[2].mxu1 %v514_v12 }
  0xff   : > { %v515_v19 = vmax.f32 %v477_v17, 0.0  ;;  %v1079_v20 = vpop.f32.mrb[12].mxu0 }
 0x100   : > { %v492_v21 = vadd.f32 %v1079_v20, %v961_v47  ;;  %v486_v22 = vpop.f32.mrb[13].mxu0 }
 0x101   : > { %v487_v23 = vadd.f32 %v961_v47, %v486_v22  ;;  %1130 = vmatprep.mubr.f32.mxu1 %v515_v19 }
 0x102   : > { %v518_v24 = vmax.f32 %v492_v21, 0.0  ;;  %1131 = vmatmul.mubr.f32.gmra.mrb[4].mxu1 %v516_v18 }
 0x103   : > { %v517_v25 = vmax.f32 %v487_v23, 0.0  ;;  %v1082_v26 = vpop.f32.mrb[14].mxu0 }
 0x104   : > { %v502_v27 = vadd.f32 %v1082_v26, %v961_v47  ;;  %v496_v28 = vpop.f32.mrb[15].mxu0 }
 0x105   : > { %v497_v29 = vadd.f32 %v961_v47, %v496_v28  ;;  %1133 = vmatprep.mubr.f32.mxu1 %v517_v25 }
 0x106   : > { %v520_v30 = vmax.f32 %v502_v27, 0.0  ;;  %1134 = vmatmul.mubr.f32.gmra.mrb[6].mxu1 %v518_v24 }
 0x107   : > { %v519_v31 = vmax.f32 %v497_v29, 0.0 }
 0x109   : > { %1136 = vmatprep.mubr.f32.mxu1 %v519_v31 }
 0x10a   : > { %1137 = vmatmul.mubr.f32.gmra.mrb[8].mxu1 %v520_v30 }
 0x1c1   : > { %v1117_v33 = vpop.f32.mrb[16].mxu0 }
 0x1c2   : > { %v616_v34 = vadd.f32 %v1117_v33, %v1434_v32  ;;  %v610_v35 = vpop.f32.mrb[17].mxu0 }
 0x1c3   : > { %v611_v36 = vadd.f32 %v1434_v32, %v610_v35  ;;  %v1473_v35 = vld [vmem:[#allocation2] ss:$0 sm:$0xff] }
 0x1c4   : > { %v690_v38 = vmax.f32 %v616_v34, 0.0 }
 0x1c5   : > { %v1120_v39 = vpop.f32.mrb[18].mxu0  ;;  %v689_v40 = vmax.f32 %v611_v36, 0.0 }
 0x1c6   : > { %v626_v41 = vadd.f32 %v1120_v39, %v1434_v32  ;;  %v620_v42 = vpop.f32.mrb[19].mxu0  ;;  %v714_v43 = vmul.f32 %v1441_v37, %v690_v38 }
 0x1c7   : > { %v621_v44 = vadd.f32 %v1434_v32, %v620_v42  ;;  %v713_v51 = vmul.f32 %v1441_v37, %v689_v40 }
 0x1c8   : > { %v692_v45 = vmax.f32 %v626_v41, 0.0  ;;  %731 = vadd.xlane.f32.xlu0 %v714_v43 }
 0x1c9   : > { %v1123_v46 = vpop.f32.mrb[20].mxu0  ;;  %v691_v47 = vmax.f32 %v621_v44, 0.0 }
 0x1ca   : > { %v636_v48 = vadd.f32 %v1123_v46, %v1434_v32  ;;  %v630_v49 = vpop.f32.mrb[21].mxu0  ;;  %v716_v50 = vmul.f32 %v1441_v37, %v692_v45 }
 0x1cb   : > { %v631_v52 = vadd.f32 %v1434_v32, %v630_v49  ;;  %v715_v58 = vmul.f32 %v1441_v37, %v691_v47 }
 0x1cc   : > { %735 = vadd.xlane.f32.xlu1 %v716_v50  ;;  %729 = vadd.xlane.f32.xlu0 %v713_v51  ;;  %v694_v55 = vmax.f32 %v636_v48, 0.0 }
 0x1cd   : > { %v693_v53 = vmax.f32 %v631_v52, 0.0  ;;  %v1126_v54 = vpop.f32.mrb[0].mxu1 }
 0x1ce   : > { %v646_v56 = vadd.f32 %v1126_v54, %v1434_v32  ;;  %v640_v57 = vpop.f32.mrb[1].mxu1  ;;  %v718_v2 = vmul.f32 %v1441_v37, %v694_v55 }
 0x1cf   : > { %v641_v59 = vadd.f32 %v1434_v32, %v640_v57  ;;  %v717_v60 = vmul.f32 %v1441_v37, %v693_v53 }
 0x1d0   : > { %733 = vadd.xlane.f32.xlu1 %v715_v58  ;;  %v696_v63 = vmax.f32 %v646_v56, 0.0 }
 0x1d1   : > { %v695_v61 = vmax.f32 %v641_v59, 0.0  ;;  %v1129_v62 = vpop.f32.mrb[2].mxu1  ;;  %737 = vadd.xlane.f32.xlu0 %v717_v60 }
 0x1d2   : > { %v656_v0 = vadd.f32 %v1129_v62, %v1434_v32  ;;  %v650_v1 = vpop.f32.mrb[3].mxu1  ;;  %v720_v10 = vmul.f32 %v1441_v37, %v696_v63 }
 0x1d3   : > { %v651_v3 = vadd.f32 %v1434_v32, %v650_v1  ;;  %v719_v4 = vmul.f32 %v1441_v37, %v695_v61 }
 0x1d4   : > { %739 = vadd.xlane.f32.xlu1 %v718_v2  ;;  %v698_v7 = vmax.f32 %v656_v0, 0.0 }
 0x1d5   : > { %v697_v5 = vmax.f32 %v651_v3, 0.0  ;;  %v1132_v6 = vpop.f32.mrb[4].mxu1  ;;  %741 = vadd.xlane.f32.xlu0 %v719_v4 }
 0x1d6   : > { %v666_v8 = vadd.f32 %v1132_v6, %v1434_v32  ;;  %v660_v9 = vpop.f32.mrb[5].mxu1  ;;  %v722_v18 = vmul.f32 %v1441_v37, %v698_v7 }
 0x1d7   : > { %v661_v11 = vadd.f32 %v1434_v32, %v660_v9  ;;  %v721_v12 = vmul.f32 %v1441_v37, %v697_v5 }
 0x1d8   : > { %743 = vadd.xlane.f32.xlu1 %v720_v10  ;;  %v700_v15 = vmax.f32 %v666_v8, 0.0 }
 0x1d9   : > { %v699_v13 = vmax.f32 %v661_v11, 0.0  ;;  %v1135_v14 = vpop.f32.mrb[6].mxu1  ;;  %745 = vadd.xlane.f32.xlu0 %v721_v12 }
 0x1da   : > { %v676_v16 = vadd.f32 %v1135_v14, %v1434_v32  ;;  %v670_v17 = vpop.f32.mrb[7].mxu1  ;;  %v724_v26 = vmul.f32 %v1441_v37, %v700_v15 }
 0x1db   : > { %v671_v19 = vadd.f32 %v1434_v32, %v670_v17  ;;  %v723_v20 = vmul.f32 %v1441_v37, %v699_v13 }
 0x1dc   : > { %747 = vadd.xlane.f32.xlu1 %v722_v18  ;;  %v702_v23 = vmax.f32 %v676_v16, 0.0 }
 0x1dd   : > { %v701_v21 = vmax.f32 %v671_v19, 0.0  ;;  %v1138_v22 = vpop.f32.mrb[8].mxu1  ;;  %749 = vadd.xlane.f32.xlu0 %v723_v20 }
 0x1de   : > { %v686_v24 = vadd.f32 %v1138_v22, %v1434_v32  ;;  %v680_v25 = vpop.f32.mrb[9].mxu1  ;;  %v726_v31 = vmul.f32 %v1441_v37, %v702_v23 }
 0x1df   : > { %v681_v27 = vadd.f32 %v1434_v32, %v680_v25  ;;  %v725_v28 = vmul.f32 %v1441_v37, %v701_v21 }
 0x1e0   : > { %751 = vadd.xlane.f32.xlu1 %v724_v26  ;;  %v704_v30 = vmax.f32 %v686_v24, 0.0 }
 0x1e1   : > { %v703_v29 = vmax.f32 %v681_v27, 0.0  ;;  %753 = vadd.xlane.f32.xlu0 %v725_v28 }
 0x1e2   : > { %v728_v34 = vmul.f32 %v1441_v37, %v704_v30 }
 0x1e3   : > { %v727_v33 = vmul.f32 %v1441_v37, %v703_v29 }
 0x1e4   : > { %755 = vadd.xlane.f32.xlu1 %v726_v31 }
 0x1e5   : > { %757 = vadd.xlane.f32.xlu0 %v727_v33 }
 0x1e8   : > { %759 = vadd.xlane.f32.xlu1 %v728_v34 }
 0x255   : > { %v732_v36 = vpop.xlane.xlu0 %731 }
 0x256   : > { %v768_v32 = vadd.f32 %v1473_v35, %v732_v36 }
 0x258   : > { %v982_v38 = vmul.f32 -1.442695, %v768_v32 }
 0x259   : > { %v736_v39 = vpop.xlane.xlu1 %735  ;;  %v730_v40 = vpop.xlane.xlu0 %729 }
 0x25a   : > { %1203 = vpow2.f32 %v982_v38  ;;  %v770_v41 = vadd.f32 %v1473_v35, %v736_v39  ;;  %v767_v42 = vadd.f32 %v1473_v35, %v730_v40 }
 0x25c   : > { %v984_v43 = vmul.f32 -1.442695, %v770_v41  ;;  %v981_v44 = vmul.f32 -1.442695, %v767_v42 }
 0x25d   : > { %v734_v45 = vpop.xlane.xlu1 %733 }
 0x25e   : > { %1205 = vpow2.f32 %v984_v43  ;;  %v769_v37 = vadd.f32 %v1473_v35, %v734_v45  ;;  %v738_v46 = vpop.xlane.xlu0 %737 }
 0x25f   : > { %1207 = vpow2.f32 %v981_v44  ;;  %v771_v47 = vadd.f32 %v1473_v35, %v738_v46 }
 0x260   : > { %v983_v48 = vmul.f32 -1.442695, %v769_v37 }
 0x261   : > { %v985_v49 = vmul.f32 -1.442695, %v771_v47  ;;  %v740_v50 = vpop.xlane.xlu1 %739 }
 0x262   : > { %1209 = vpow2.f32 %v983_v48  ;;  %v772_v51 = vadd.f32 %v1473_v35, %v740_v50  ;;  %v742_v52 = vpop.xlane.xlu0 %741 }
 0x263   : > { %1211 = vpow2.f32 %v985_v49  ;;  %v773_v53 = vadd.f32 %v1473_v35, %v742_v52 }
 0x264   : > { %v1204_v54 = vpop.eup %1203  ;;  %v986_v55 = vmul.f32 -1.442695, %v772_v51 }
 0x265   : > { %v832_v56 = vadd.f32 1.0, %v1204_v54  ;;  %v987_v57 = vmul.f32 -1.442695, %v773_v53  ;;  %v744_v58 = vpop.xlane.xlu1 %743 }
 0x266   : > { %1213 = vpow2.f32 %v986_v55  ;;  %v774_v59 = vadd.f32 %v1473_v35, %v744_v58  ;;  %v746_v60 = vpop.xlane.xlu0 %745 }
 0x267   : > { %1215 = vrcp.f32 %v832_v56  ;;  %v775_v61 = vadd.f32 %v1473_v35, %v746_v60 }
 0x268   : > { %v1206_v62 = vpop.eup %1205  ;;  %1217 = vpow2.f32 %v987_v57  ;;  %v988_v63 = vmul.f32 -1.442695, %v774_v59 }
 0x269   : > { %v1208_v0 = vpop.eup %1207  ;;  %v834_v1 = vadd.f32 1.0, %v1206_v62  ;;  %v989_v2 = vmul.f32 -1.442695, %v775_v61  ;;  %v748_v3 = vpop.xlane.xlu1 %747 }
 0x26a   : > { %v831_v4 = vadd.f32 1.0, %v1208_v0  ;;  %1219 = vpow2.f32 %v988_v63  ;;  %v776_v5 = vadd.f32 %v1473_v35, %v748_v3  ;;  %v750_v6 = vpop.xlane.xlu0 %749 }
 0x26b   : > { %1221 = vrcp.f32 %v834_v1  ;;  %v777_v7 = vadd.f32 %v1473_v35, %v750_v6 }
 0x26c   : > { %v1210_v8 = vpop.eup %1209  ;;  %1223 = vrcp.f32 %v831_v4  ;;  %v990_v9 = vmul.f32 -1.442695, %v776_v5 }
 0x26d   : > { %v1212_v10 = vpop.eup %1211  ;;  %v833_v11 = vadd.f32 1.0, %v1210_v8  ;;  %1225 = vpow2.f32 %v989_v2  ;;  %v991_v12 = vmul.f32 -1.442695, %v777_v7  ;;  %v752_v13 = vpop.xlane.xlu1 %751 }
 0x26e   : > { %v835_v14 = vadd.f32 1.0, %v1212_v10  ;;  %1227 = vpow2.f32 %v990_v9  ;;  %v778_v15 = vadd.f32 %v1473_v35, %v752_v13  ;;  %v754_v16 = vpop.xlane.xlu0 %753 }
 0x26f   : > { %1229 = vrcp.f32 %v833_v11  ;;  %v779_v17 = vadd.f32 %v1473_v35, %v754_v16 }
 0x270   : > { %v1214_v18 = vpop.eup %1213  ;;  %1231 = vrcp.f32 %v835_v14  ;;  %v992_v19 = vmul.f32 -1.442695, %v778_v15 }
 0x271   : > { %v1216_v20 = vpop.eup %1215  ;;  %v836_v21 = vadd.f32 1.0, %v1214_v18  ;;  %1233 = vpow2.f32 %v991_v12  ;;  %v993_v22 = vmul.f32 -1.442695, %v779_v17  ;;  %v756_v23 = vpop.xlane.xlu1 %755 }
 0x272   : > { %v1218_v24 = vpop.eup %1217  ;;  %881 = vst.msk [vmem:[%s1492_s14 + $0x8] sm:$0xff] %vm879_vm1, %v1216_v20  ;;  %1235 = vpow2.f32 %v992_v19  ;;  %v780_v25 = vadd.f32 %v1473_v35, %v756_v23  ;;  %v758_v26 = vpop.xlane.xlu0 %757 }
 0x273   : > { %1237 = vrcp.f32 %v836_v21  ;;  %v837_v27 = vadd.f32 1.0, %v1218_v24  ;;  %v781_v28 = vadd.f32 %v1473_v35, %v758_v26 }
 0x274   : > { %v1220_v29 = vpop.eup %1219  ;;  %1239 = vpow2.f32 %v993_v22  ;;  %v994_v30 = vmul.f32 -1.442695, %v780_v25 }
 0x275   : > { %v1222_v31 = vpop.eup %1221  ;;  %1241 = vrcp.f32 %v837_v27  ;;  %v838_v33 = vadd.f32 1.0, %v1220_v29  ;;  %v995_v34 = vmul.f32 -1.442695, %v781_v28  ;;  %v760_v36 = vpop.xlane.xlu1 %759 }
 0x276   : > { %v1224_v32 = vpop.eup %1223  ;;  %883 = vst.msk [vmem:[%s1492_s14 + $0x18] sm:$0xff] %vm879_vm1, %v1222_v31  ;;  %1243 = vpow2.f32 %v994_v30  ;;  %v782_v38 = vadd.f32 %v1473_v35, %v760_v36 }
 0x277   : > { %v1226_v39 = vpop.eup %1225  ;;  %880 = vst.msk [vmem:[%s1492_s14] sm:$0xff] %vm879_vm1, %v1224_v32  ;;  %1245 = vrcp.f32 %v838_v33 }
 0x278   : > { %v1228_v40 = vpop.eup %1227  ;;  %v839_v41 = vadd.f32 1.0, %v1226_v39  ;;  %1247 = vpow2.f32 %v995_v34  ;;  %v996_v42 = vmul.f32 -1.442695, %v782_v38 }
 0x279   : > { %v1230_v43 = vpop.eup %1229  ;;  %v840_v44 = vadd.f32 1.0, %v1228_v40 }
 0x27a   : > { %v1232_v45 = vpop.eup %1231  ;;  %882 = vst.msk [vmem:[%s1492_s14 + $0x10] sm:$0xff] %vm879_vm1, %v1230_v43  ;;  %1249 = vrcp.f32 %v839_v41 }
 0x27b   : > { %v1234_v37 = vpop.eup %1233  ;;  %884 = vst.msk [vmem:[%s1492_s14 + $0x20] sm:$0xff] %vm879_vm1, %v1232_v45  ;;  %1251 = vrcp.f32 %v840_v44 }
 0x27c   : > { %v1236_v35 = vpop.eup %1235  ;;  %v841_v46 = vadd.f32 1.0, %v1234_v37  ;;  %1253 = vpow2.f32 %v996_v42 }
 0x27d   : > { %v1238_v47 = vpop.eup %1237  ;;  %v842_v48 = vadd.f32 1.0, %v1236_v35 }
 0x27e   : > { %v1240_v49 = vpop.eup %1239  ;;  %885 = vst.msk [vmem:[%s1492_s14 + $0x28] sm:$0xff] %vm879_vm1, %v1238_v47  ;;  %1255 = vrcp.f32 %v841_v46 }
 0x27f   : > { %v1242_v50 = vpop.eup %1241  ;;  %1257 = vrcp.f32 %v842_v48  ;;  %v843_v51 = vadd.f32 1.0, %v1240_v49 }
 0x280   : > { %v1244_v52 = vpop.eup %1243  ;;  %886 = vst.msk [vmem:[%s1492_s14 + $0x30] sm:$0xff] %vm879_vm1, %v1242_v50 }
 0x281   : > { %v1246_v53 = vpop.eup %1245  ;;  %1259 = vrcp.f32 %v843_v51  ;;  %v844_v54 = vadd.f32 1.0, %v1244_v52 }
 0x282   : > { %v1248_v55 = vpop.eup %1247  ;;  %887 = vst.msk [vmem:[%s1492_s14 + $0x38] sm:$0xff] %vm879_vm1, %v1246_v53 }
 0x283   : > { %1261 = vrcp.f32 %v844_v54  ;;  %v845_v56 = vadd.f32 1.0, %v1248_v55 }
 0x284   : > { %v1250_v57 = vpop.eup %1249 }
 0x285   : > { %v1252_v58 = vpop.eup %1251  ;;  %888 = vst.msk [vmem:[%s1492_s14 + $0x40] sm:$0xff] %vm879_vm1, %v1250_v57  ;;  %1263 = vrcp.f32 %v845_v56 }
 0x286   : > { %v1254_v59 = vpop.eup %1253  ;;  %889 = vst.msk [vmem:[%s1492_s14 + $0x48] sm:$0xff] %vm879_vm1, %v1252_v58 }
 0x287   : > { %v846_v60 = vadd.f32 1.0, %v1254_v59 }
 0x288   : > { %v1256_v61 = vpop.eup %1255 }
 0x289   : > { %v1258_v62 = vpop.eup %1257  ;;  %890 = vst.msk [vmem:[%s1492_s14 + $0x50] sm:$0xff] %vm879_vm1, %v1256_v61  ;;  %1265 = vrcp.f32 %v846_v60 }
 0x28a   : > { %891 = vst.msk [vmem:[%s1492_s14 + $0x58] sm:$0xff] %vm879_vm1, %v1258_v62 }
 0x28b   : > { %v1260_v63 = vpop.eup %1259 }
 0x28c   : > { %892 = vst.msk [vmem:[%s1492_s14 + $0x60] sm:$0xff] %vm879_vm1, %v1260_v63 }
 0x28d   : > { %v1262_v0 = vpop.eup %1261 }
 0x28e   : > { %893 = vst.msk [vmem:[%s1492_s14 + $0x68] sm:$0xff] %vm879_vm1, %v1262_v0 }
 0x28f   : > { %v1264_v1 = vpop.eup %1263 }
 0x290   : > { %894 = vst.msk [vmem:[%s1492_s14 + $0x70] sm:$0xff] %vm879_vm1, %v1264_v1 }
 0x293   : > { %v1266_v2 = vpop.eup %1265 }
 0x294   : > { %895 = vst.msk [vmem:[%s1492_s14 + $0x78] sm:$0xff] %vm879_vm1, %v1266_v2 }
 0x295 PF: > { %s19_s26 = sadd.s32 1, %s1273_s26  }
 0x296   : > { %p16_p4 = scmp.ge.s32.totalorder %s19_s26, 4  }
 0x298   :  { %18 = sbr.rel (!%p16_p4) target bundleno = 3 (0x3), region = 78 }

</bundles_post_ra>
